<compile_context>
chip_gen: v6e
topology: v6e:2x2x1
jax: 0.10.0
libtpu: 0.0.40
codegen_flags: <defaults>
</compile_context>

<pallas_src>
import functools

import jax
import jax.numpy as jnp
from jax.experimental import pallas as pl
from jax.experimental.pallas import tpu as pltpu

# Feature dimensions of FcnTorch
IN_FEATURES = 80
H1, H2, H3, H4, H5 = 512, 256, 128, 64, 32
OUT_FEATURES = 45
DIMS = (IN_FEATURES, H1, H2, H3, H4, H5, OUT_FEATURES)


def _round_up(x, m):
    return (x + m - 1) // m * m


def _default_act_dtype():
    """bf16 activations on chips with a bf16 VPU (v6e/v7x); f32 elsewhere (v5e)."""
    try:
        kind = jax.devices()[0].device_kind.lower()
    except Exception:
        return jnp.float32
    if "v6" in kind or "v7" in kind:
        return jnp.bfloat16
    return jnp.float32


def _fcn_kernel(x_ref,
                w1_ref, b1_ref,
                w2_ref, b2_ref,
                w3_ref, b3_ref,
                w4_ref, b4_ref,
                w5_ref, b5_ref,
                w6_ref, b6_ref,
                o_ref, *, act_dtype):
    """Fused MLP: 6 x (bf16 matmul -> f32 acc + f32 bias), ReLU on first 5."""

    def layer(h, w_ref, b_ref, relu):
        # bf16 operands feed the MXU at full rate; accumulate in f32.
        y = jnp.dot(h.astype(jnp.bfloat16), w_ref[...],
                    preferred_element_type=jnp.float32)
        y = y + b_ref[...]                      # bias add in f32 (VPU)
        if relu:
            # Hand off to the next layer in act_dtype: bf16 on v6e/v7x halves
            # vreg pressure / VMEM bytes; f32 on v5e (no bf16 VPU there).
            y = jnp.maximum(y, 0.0).astype(act_dtype)
        return y

    h = layer(x_ref[...], w1_ref, b1_ref, True)
    h = layer(h, w2_ref, b2_ref, True)
    h = layer(h, w3_ref, b3_ref, True)
    h = layer(h, w4_ref, b4_ref, True)
    h = layer(h, w5_ref, b5_ref, True)
    o_ref[...] = layer(h, w6_ref, b6_ref, False).astype(o_ref.dtype)


@functools.partial(jax.jit, static_argnums=(2, 3))
def _fcn_forward_jit(x, params, batch_tile, act_dtype):
    n, f = x.shape
    assert f == IN_FEATURES

    # --- parameter prep: bf16 weights (f32 accumulation on the MXU), f32
    #     biases.  No padding of the final layer: the (tile, 45) output block
    #     is legal (last dim equals the full array dim) and its HBM writeback
    #     is contiguous full rows. ---
    prepped = []
    for k in range(6):
        w, b = params[2 * k], params[2 * k + 1]
        prepped.append(w.astype(jnp.bfloat16))
        prepped.append(b.astype(jnp.float32))

    # --- batch tiling ---
    # Big tiles amortize the ~0.35 us/step grid overhead and per-step MXU
    # push/drain.  Cap the tile so there are >= 2 grid steps when there is
    # enough work, keeping both v7x TensorCores busy via the "parallel" axis.
    # Ragged batches are handled by Pallas boundary blocks (no jnp.pad over x,
    # no row slice on the output; OOB rows of the last block are masked off).
    tile = min(batch_tile, _round_up(n, 8))
    if n > 8:
        tile = min(tile, _round_up(pl.cdiv(n, 2), 8))
    tile = max(tile, 8)
    grid = (pl.cdiv(n, tile),)

    x_spec = pl.BlockSpec((tile, IN_FEATURES), lambda i: (i, 0))
    out_spec = pl.BlockSpec((tile, OUT_FEATURES), lambda i: (i, 0))

    in_dims = DIMS[:-1]
    out_dims = DIMS[1:]
    param_specs = []
    for d_in, d_out in zip(in_dims, out_dims):
        # Weights / biases are resident: block index is constant across the grid.
        param_specs.append(pl.BlockSpec((d_in, d_out), lambda i: (0, 0)))
        param_specs.append(pl.BlockSpec((1, d_out), lambda i: (0, 0)))

    return pl.pallas_call(
        functools.partial(_fcn_kernel, act_dtype=act_dtype),
        out_shape=jax.ShapeDtypeStruct((n, OUT_FEATURES), jnp.float32),
        grid_spec=pltpu.PrefetchScalarGridSpec(
            num_scalar_prefetch=0,
            grid=grid,
            in_specs=[x_spec] + param_specs,
            out_specs=out_spec,
        ),
        compiler_params=pltpu.CompilerParams(
            dimension_semantics=("parallel",),   # shards batch tiles across TCs
            vmem_limit_bytes=32 * 1024 * 1024,   # headroom for big tiles on v5e
        ),
    )(x, *prepped)


def fcn_forward(x, params, *, batch_tile=512, act_dtype=None):
    """Run the fused MLP kernel.

    x: (N, IN_FEATURES) float32
    params: flat tuple (w1, b1, ..., w6, b6) with wi: (in_i, out_i) f32,
            bi: (1, out_i) f32 (i.e. PyTorch weights transposed).
    """
    if act_dtype is None:
        act_dtype = _default_act_dtype()
    return _fcn_forward_jit(x, params, batch_tile, act_dtype)


def init_params(key):
    """Deterministic parameter init (PyTorch-Linear-style uniform ranges)."""
    params = []
    for k in range(6):
        d_in, d_out = DIMS[k], DIMS[k + 1]
        key, kw, kb = jax.random.split(key, 3)
        bound = 1.0 / jnp.sqrt(jnp.float32(d_in))
        # Stored transposed relative to torch: (in, out)
        w = jax.random.uniform(kw, (d_in, d_out), jnp.float32, -bound, bound)
        b = jax.random.uniform(kb, (1, d_out), jnp.float32, -bound, bound)
        params += [w, b]
    return tuple(params)


def fcn_reference(x, params):
    """Pure-JAX f32 reference for correctness checking."""
    h = x
    for k in range(5):
        w, b = params[2 * k], params[2 * k + 1]
        h = jnp.maximum(h @ w + b, 0.0)
    w, b = params[10], params[11]
    return h @ w + b


if __name__ == "__main__":
    key = jax.random.PRNGKey(0)
    key, kx = jax.random.split(key)

    # Ragged batch (not a multiple of the tile) to exercise the boundary-block
    # path and the >= 2-step grid.
    batch = 19
    x = jax.random.normal(kx, (batch, IN_FEATURES), dtype=jnp.float32)
    params = init_params(key)

    out = jax.block_until_ready(fcn_forward(x, params))
    ref = fcn_reference(x, params)

    assert out.shape == (batch, OUT_FEATURES), out.shape
    max_err = float(jnp.max(jnp.abs(out - ref)))
    # bf16 weights (and bf16 activations on v6e/v7x) vs f32 reference.
    assert jnp.allclose(out, ref, atol=5e-2, rtol=5e-2), max_err

    print("KERNEL_OK")
</pallas_src>

<mosaic_0001>
module attributes {stable_mosaic.version = 11 : i64} {
  func.func @_fcn_kernel(%arg0: i32, %arg1: memref<16x80xf32, #tpu.memory_space<vmem>>, %arg2: memref<80x512xbf16, #tpu.memory_space<vmem>>, %arg3: memref<1x512xf32, #tpu.memory_space<vmem>>, %arg4: memref<512x256xbf16, #tpu.memory_space<vmem>>, %arg5: memref<1x256xf32, #tpu.memory_space<vmem>>, %arg6: memref<256x128xbf16, #tpu.memory_space<vmem>>, %arg7: memref<1x128xf32, #tpu.memory_space<vmem>>, %arg8: memref<128x64xbf16, #tpu.memory_space<vmem>>, %arg9: memref<1x64xf32, #tpu.memory_space<vmem>>, %arg10: memref<64x32xbf16, #tpu.memory_space<vmem>>, %arg11: memref<1x32xf32, #tpu.memory_space<vmem>>, %arg12: memref<32x45xbf16, #tpu.memory_space<vmem>>, %arg13: memref<1x45xf32, #tpu.memory_space<vmem>>, %arg14: memref<16x45xf32, #tpu.memory_space<vmem>>) attributes {dimension_semantics = [#tpu.dimension_semantics<parallel>], iteration_bounds = array<i64: 2>, scalar_prefetch = 0 : i64, scratch_operands = 0 : i64, tpu.core_type = #tpu.core_type<tc>, window_params = [{transform_indices = @transform_0, window_bounds = array<i64: 16, 80>}, {pipeline_mode = #tpu.pipeline_mode<synchronous>, transform_indices = @transform_1, window_bounds = array<i64: 80, 512>}, {pipeline_mode = #tpu.pipeline_mode<synchronous>, transform_indices = @transform_2, window_bounds = array<i64: 1, 512>}, {pipeline_mode = #tpu.pipeline_mode<synchronous>, transform_indices = @transform_3, window_bounds = array<i64: 512, 256>}, {pipeline_mode = #tpu.pipeline_mode<synchronous>, transform_indices = @transform_4, window_bounds = array<i64: 1, 256>}, {pipeline_mode = #tpu.pipeline_mode<synchronous>, transform_indices = @transform_5, window_bounds = array<i64: 256, 128>}, {pipeline_mode = #tpu.pipeline_mode<synchronous>, transform_indices = @transform_6, window_bounds = array<i64: 1, 128>}, {pipeline_mode = #tpu.pipeline_mode<synchronous>, transform_indices = @transform_7, window_bounds = array<i64: 128, 64>}, {pipeline_mode = #tpu.pipeline_mode<synchronous>, transform_indices = @transform_8, window_bounds = array<i64: 1, 64>}, {pipeline_mode = #tpu.pipeline_mode<synchronous>, transform_indices = @transform_9, window_bounds = array<i64: 64, 32>}, {pipeline_mode = #tpu.pipeline_mode<synchronous>, transform_indices = @transform_10, window_bounds = array<i64: 1, 32>}, {pipeline_mode = #tpu.pipeline_mode<synchronous>, transform_indices = @transform_11, window_bounds = array<i64: 32, 45>}, {pipeline_mode = #tpu.pipeline_mode<synchronous>, transform_indices = @transform_12, window_bounds = array<i64: 1, 45>}, {transform_indices = @transform_13, window_bounds = array<i64: 16, 45>}]} {
    %c0 = arith.constant 0 : index
    %c0_0 = arith.constant 0 : index
    %0 = vector.load %arg1[%c0, %c0_0] : memref<16x80xf32, #tpu.memory_space<vmem>>, vector<16x80xf32>
    %1 = arith.truncf %0 : vector<16x80xf32> to vector<16x80xbf16>
    %c0_1 = arith.constant 0 : index
    %c0_2 = arith.constant 0 : index
    %2 = vector.load %arg2[%c0_1, %c0_2] : memref<80x512xbf16, #tpu.memory_space<vmem>>, vector<80x512xbf16>
    %cst = arith.constant dense<0.000000e+00> : vector<16x512xf32>
    %3 = tpu.matmul %1, %2, %cst {dimension_numbers = #tpu.dot_dimension_numbers<[1], [0], [0], [1], [0, 0, 1, 1], [], []>} : vector<16x80xbf16>, vector<80x512xbf16>, vector<16x512xf32> -> vector<16x512xf32>
    %c0_3 = arith.constant 0 : index
    %c0_4 = arith.constant 0 : index
    %4 = vector.load %arg3[%c0_3, %c0_4] : memref<1x512xf32, #tpu.memory_space<vmem>>, vector<1x512xf32>
    %5 = vector.broadcast %4 : vector<1x512xf32> to vector<16x512xf32>
    %6 = arith.addf %3, %5 : vector<16x512xf32>
    %cst_5 = arith.constant 0.000000e+00 : f32
    %7 = vector.broadcast %cst_5 : f32 to vector<16x512xf32>
    %8 = arith.maximumf %6, %7 : vector<16x512xf32>
    %9 = arith.truncf %8 : vector<16x512xf32> to vector<16x512xbf16>
    %c0_6 = arith.constant 0 : index
    %c0_7 = arith.constant 0 : index
    %10 = vector.load %arg4[%c0_6, %c0_7] : memref<512x256xbf16, #tpu.memory_space<vmem>>, vector<512x256xbf16>
    %cst_8 = arith.constant dense<0.000000e+00> : vector<16x256xf32>
    %11 = tpu.matmul %9, %10, %cst_8 {dimension_numbers = #tpu.dot_dimension_numbers<[1], [0], [0], [1], [0, 0, 1, 1], [], []>} : vector<16x512xbf16>, vector<512x256xbf16>, vector<16x256xf32> -> vector<16x256xf32>
    %c0_9 = arith.constant 0 : index
    %c0_10 = arith.constant 0 : index
    %12 = vector.load %arg5[%c0_9, %c0_10] : memref<1x256xf32, #tpu.memory_space<vmem>>, vector<1x256xf32>
    %13 = vector.broadcast %12 : vector<1x256xf32> to vector<16x256xf32>
    %14 = arith.addf %11, %13 : vector<16x256xf32>
    %cst_11 = arith.constant 0.000000e+00 : f32
    %15 = vector.broadcast %cst_11 : f32 to vector<16x256xf32>
    %16 = arith.maximumf %14, %15 : vector<16x256xf32>
    %17 = arith.truncf %16 : vector<16x256xf32> to vector<16x256xbf16>
    %c0_12 = arith.constant 0 : index
    %c0_13 = arith.constant 0 : index
    %18 = vector.load %arg6[%c0_12, %c0_13] : memref<256x128xbf16, #tpu.memory_space<vmem>>, vector<256x128xbf16>
    %cst_14 = arith.constant dense<0.000000e+00> : vector<16x128xf32>
    %19 = tpu.matmul %17, %18, %cst_14 {dimension_numbers = #tpu.dot_dimension_numbers<[1], [0], [0], [1], [0, 0, 1, 1], [], []>} : vector<16x256xbf16>, vector<256x128xbf16>, vector<16x128xf32> -> vector<16x128xf32>
    %c0_15 = arith.constant 0 : index
    %c0_16 = arith.constant 0 : index
    %20 = vector.load %arg7[%c0_15, %c0_16] : memref<1x128xf32, #tpu.memory_space<vmem>>, vector<1x128xf32>
    %21 = vector.broadcast %20 : vector<1x128xf32> to vector<16x128xf32>
    %22 = arith.addf %19, %21 : vector<16x128xf32>
    %cst_17 = arith.constant 0.000000e+00 : f32
    %23 = vector.broadcast %cst_17 : f32 to vector<16x128xf32>
    %24 = arith.maximumf %22, %23 : vector<16x128xf32>
    %25 = arith.truncf %24 : vector<16x128xf32> to vector<16x128xbf16>
    %c0_18 = arith.constant 0 : index
    %c0_19 = arith.constant 0 : index
    %26 = vector.load %arg8[%c0_18, %c0_19] : memref<128x64xbf16, #tpu.memory_space<vmem>>, vector<128x64xbf16>
    %cst_20 = arith.constant dense<0.000000e+00> : vector<16x64xf32>
    %27 = tpu.matmul %25, %26, %cst_20 {dimension_numbers = #tpu.dot_dimension_numbers<[1], [0], [0], [1], [0, 0, 1, 1], [], []>} : vector<16x128xbf16>, vector<128x64xbf16>, vector<16x64xf32> -> vector<16x64xf32>
    %c0_21 = arith.constant 0 : index
    %c0_22 = arith.constant 0 : index
    %28 = vector.load %arg9[%c0_21, %c0_22] : memref<1x64xf32, #tpu.memory_space<vmem>>, vector<1x64xf32>
    %29 = vector.broadcast %28 : vector<1x64xf32> to vector<16x64xf32>
    %30 = arith.addf %27, %29 : vector<16x64xf32>
    %cst_23 = arith.constant 0.000000e+00 : f32
    %31 = vector.broadcast %cst_23 : f32 to vector<16x64xf32>
    %32 = arith.maximumf %30, %31 : vector<16x64xf32>
    %33 = arith.truncf %32 : vector<16x64xf32> to vector<16x64xbf16>
    %c0_24 = arith.constant 0 : index
    %c0_25 = arith.constant 0 : index
    %34 = vector.load %arg10[%c0_24, %c0_25] : memref<64x32xbf16, #tpu.memory_space<vmem>>, vector<64x32xbf16>
    %cst_26 = arith.constant dense<0.000000e+00> : vector<16x32xf32>
    %35 = tpu.matmul %33, %34, %cst_26 {dimension_numbers = #tpu.dot_dimension_numbers<[1], [0], [0], [1], [0, 0, 1, 1], [], []>} : vector<16x64xbf16>, vector<64x32xbf16>, vector<16x32xf32> -> vector<16x32xf32>
    %c0_27 = arith.constant 0 : index
    %c0_28 = arith.constant 0 : index
    %36 = vector.load %arg11[%c0_27, %c0_28] : memref<1x32xf32, #tpu.memory_space<vmem>>, vector<1x32xf32>
    %37 = vector.broadcast %36 : vector<1x32xf32> to vector<16x32xf32>
    %38 = arith.addf %35, %37 : vector<16x32xf32>
    %cst_29 = arith.constant 0.000000e+00 : f32
    %39 = vector.broadcast %cst_29 : f32 to vector<16x32xf32>
    %40 = arith.maximumf %38, %39 : vector<16x32xf32>
    %41 = arith.truncf %40 : vector<16x32xf32> to vector<16x32xbf16>
    %c0_30 = arith.constant 0 : index
    %c0_31 = arith.constant 0 : index
    %42 = vector.load %arg12[%c0_30, %c0_31] : memref<32x45xbf16, #tpu.memory_space<vmem>>, vector<32x45xbf16>
    %cst_32 = arith.constant dense<0.000000e+00> : vector<16x45xf32>
    %43 = tpu.matmul %41, %42, %cst_32 {dimension_numbers = #tpu.dot_dimension_numbers<[1], [0], [0], [1], [0, 0, 1, 1], [], []>} : vector<16x32xbf16>, vector<32x45xbf16>, vector<16x45xf32> -> vector<16x45xf32>
    %c0_33 = arith.constant 0 : index
    %c0_34 = arith.constant 0 : index
    %44 = vector.load %arg13[%c0_33, %c0_34] : memref<1x45xf32, #tpu.memory_space<vmem>>, vector<1x45xf32>
    %45 = vector.broadcast %44 : vector<1x45xf32> to vector<16x45xf32>
    %46 = arith.addf %43, %45 : vector<16x45xf32>
    %c0_35 = arith.constant 0 : index
    %c0_36 = arith.constant 0 : index
    %47 = vector.load %arg14[%c0_35, %c0_36] : memref<16x45xf32, #tpu.memory_space<vmem>>, vector<16x45xf32>
    tpu.vector_store %arg14[%c0_35, %c0_36], %46 {strides = array<i32>} : memref<16x45xf32, #tpu.memory_space<vmem>>, vector<16x45xf32>,
    return
  }
  func.func @transform_0(%arg0: i32) -> (i32, i32) {
    %c0_i32 = arith.constant 0 : i32
    %c0_i32_0 = arith.constant 0 : i32
    return %arg0, %c0_i32 : i32, i32
  }
  func.func @transform_1(%arg0: i32) -> (i32, i32) {
    %c0_i32 = arith.constant 0 : i32
    %c0_i32_0 = arith.constant 0 : i32
    %c0_i32_1 = arith.constant 0 : i32
    return %c0_i32, %c0_i32_0 : i32, i32
  }
  func.func @transform_2(%arg0: i32) -> (i32, i32) {
    %c0_i32 = arith.constant 0 : i32
    %c0_i32_0 = arith.constant 0 : i32
    %c0_i32_1 = arith.constant 0 : i32
    return %c0_i32, %c0_i32_0 : i32, i32
  }
  func.func @transform_3(%arg0: i32) -> (i32, i32) {
    %c0_i32 = arith.constant 0 : i32
    %c0_i32_0 = arith.constant 0 : i32
    %c0_i32_1 = arith.constant 0 : i32
    return %c0_i32, %c0_i32_0 : i32, i32
  }
  func.func @transform_4(%arg0: i32) -> (i32, i32) {
    %c0_i32 = arith.constant 0 : i32
    %c0_i32_0 = arith.constant 0 : i32
    %c0_i32_1 = arith.constant 0 : i32
    return %c0_i32, %c0_i32_0 : i32, i32
  }
  func.func @transform_5(%arg0: i32) -> (i32, i32) {
    %c0_i32 = arith.constant 0 : i32
    %c0_i32_0 = arith.constant 0 : i32
    %c0_i32_1 = arith.constant 0 : i32
    return %c0_i32, %c0_i32_0 : i32, i32
  }
  func.func @transform_6(%arg0: i32) -> (i32, i32) {
    %c0_i32 = arith.constant 0 : i32
    %c0_i32_0 = arith.constant 0 : i32
    %c0_i32_1 = arith.constant 0 : i32
    return %c0_i32, %c0_i32_0 : i32, i32
  }
  func.func @transform_7(%arg0: i32) -> (i32, i32) {
    %c0_i32 = arith.constant 0 : i32
    %c0_i32_0 = arith.constant 0 : i32
    %c0_i32_1 = arith.constant 0 : i32
    return %c0_i32, %c0_i32_0 : i32, i32
  }
  func.func @transform_8(%arg0: i32) -> (i32, i32) {
    %c0_i32 = arith.constant 0 : i32
    %c0_i32_0 = arith.constant 0 : i32
    %c0_i32_1 = arith.constant 0 : i32
    return %c0_i32, %c0_i32_0 : i32, i32
  }
  func.func @transform_9(%arg0: i32) -> (i32, i32) {
    %c0_i32 = arith.constant 0 : i32
    %c0_i32_0 = arith.constant 0 : i32
    %c0_i32_1 = arith.constant 0 : i32
    return %c0_i32, %c0_i32_0 : i32, i32
  }
  func.func @transform_10(%arg0: i32) -> (i32, i32) {
    %c0_i32 = arith.constant 0 : i32
    %c0_i32_0 = arith.constant 0 : i32
    %c0_i32_1 = arith.constant 0 : i32
    return %c0_i32, %c0_i32_0 : i32, i32
  }
  func.func @transform_11(%arg0: i32) -> (i32, i32) {
    %c0_i32 = arith.constant 0 : i32
    %c0_i32_0 = arith.constant 0 : i32
    %c0_i32_1 = arith.constant 0 : i32
    return %c0_i32, %c0_i32_0 : i32, i32
  }
  func.func @transform_12(%arg0: i32) -> (i32, i32) {
    %c0_i32 = arith.constant 0 : i32
    %c0_i32_0 = arith.constant 0 : i32
    %c0_i32_1 = arith.constant 0 : i32
    return %c0_i32, %c0_i32_0 : i32, i32
  }
  func.func @transform_13(%arg0: i32) -> (i32, i32) {
    %c0_i32 = arith.constant 0 : i32
    %c0_i32_0 = arith.constant 0 : i32
    return %arg0, %c0_i32 : i32, i32
  }
}

</mosaic_0001>

<bundles_post_ra>
// kernel: _fcn_forward_jit.1
= control target key start
LH: loop header
LB: loop body
LE: loop exit
PB: predicated region body
PF: predicated region fallthrough
CT: control target
= control target key end

     0   :  { %18 = vsyncpa [#allocation3], 0  ;;  %s2801_s0 = inlined_call_operand.vmem [shape: f32[19,80], index: 0, kind: input, shape index: {}]   ;;  %s2802_s1 = inlined_call_operand.vmem [shape: bf16[80,512], index: 1, kind: input, shape index: {}]   ;;  %s2803_s2 = inlined_call_operand.vmem [shape: f32[1,512], index: 2, kind: input, shape index: {}]   ;;  %s2804_s3 = inlined_call_operand.vmem [shape: bf16[512,256], index: 3, kind: input, shape index: {}]   ;;  %s2805_s4 = inlined_call_operand.vmem [shape: f32[1,256], index: 4, kind: input, shape index: {}]   ;;  %s2806_s5 = inlined_call_operand.vmem [shape: bf16[256,128], index: 5, kind: input, shape index: {}]   ;;  %s2807_s6 = inlined_call_operand.vmem [shape: f32[1,128], index: 6, kind: input, shape index: {}]   ;;  %s2808_s7 = inlined_call_operand.vmem [shape: bf16[128,64], index: 7, kind: input, shape index: {}]   ;;  %s2809_s8 = inlined_call_operand.vmem [shape: f32[1,64], index: 8, kind: input, shape index: {}]   ;;  %s2810_s9 = inlined_call_operand.vmem [shape: bf16[64,32], index: 9, kind: input, shape index: {}]   ;;  %s2811_s10 = inlined_call_operand.vmem [shape: f32[1,32], index: 10, kind: input, shape index: {}]   ;;  %s2812_s11 = inlined_call_operand.vmem [shape: bf16[32,45], index: 11, kind: input, shape index: {}]   ;;  %s2813_s12 = inlined_call_operand.vmem [shape: f32[1,45], index: 12, kind: input, shape index: {}]   ;;  %s2814_s13 = inlined_call_operand.hbm [shape: f32[19,45], index: 13, kind: output, shape index: {}]  }
   0x1   :  { %20 = vsyncpa [#allocation3 + $0x1], 0  ;;  %s2291_s25 = smov 0   ;;  %s2293_s26 = smov 0  }
   0x2   :  { %s2295_s27 = smov 0   ;;  %s2297_s28 = smov 0  }
   0x3 LB: > { %2820 = sst [smem:[#allocation5_spill]] %s2201_s25  ;;  %s2312_s29 = sadd.s32 4294967295, %s2213_s28   ;;  %s2213_s28 = sphi %s2297_s28, %s2829_s28   ;;  %s2209_s27 = sphi %s2295_s27, %s2831_s27   ;;  %s2205_s26 = sphi %s2293_s26, %s2833_s26   ;;  %s2201_s25 = sphi %s2291_s25, %s2832_s25  }
   0x4   : > { %2821 = sst [smem:[#allocation6_spill]] %s2209_s27  ;;  %s1736_s30 = sadd.s32 4294967294, %s2213_s28  }
   0x5   : > { %s2316_s14 = sadd.s32 1, %s2213_s28   ;;  %s311_s15 = sadd.s32 1, %s2209_s27 }
   0x6   : > { %2822 = sst [smem:[#allocation7_spill]] %s2316_s14  ;;  %s308_s16 = ssub.s32 %s2213_s28, %s2316_s14 }
   0x7   : > { %p321_p0 = scmp.ne.s32.totalorder %s2209_s27, %s2205_s26  ;;  %p309_p1 = scmp.eq.s32.totalorder %s308_s16, 0 }
   0x8   : > { %p322_p2 = scmp.eq.s32.totalorder %s2312_s29, 1  ;;  %p327_p3 = scmp.ne.s32.totalorder %s2205_s26, %s2201_s25 }
   0x9   : > { %p328_p4 = scmp.eq.s32.totalorder %s1736_s30, 1  ;;  %p1739_p7 = scmp.ge.s32.totalorder %s2213_s28, 1 }
   0xa   : > { %s2327_s17 = scalar_select %p309_p1, %s2209_s27, %s311_s15  }
   0xb   : > { %p2329_p5 = por %p322_p2, %p321_p0  ;;  %p2333_p6 = por %p328_p4, %p327_p3 }
   0xc   : > { %2823 = sst [smem:[#allocation8_spill]] %s2327_s17  ;;  %p399_p8 = scmp.lt.s32.totalorder %s2213_s28, 3 }
   0xd   : > { %s2825_s19 = scalar_select %p2333_p6, 1, 0 }
   0xe   : > { %p400_p9 = pnand %p1739_p7, %p399_p8 }
   0xf   : > { %2826 = sst [smem:[#allocation9_spill]] %s2825_s19  ;;  %s2343_s22 = sshll.u32 (!%p400_p9), %s2312_s29, 1 }
  0x10   : > { %403 = sbr.rel (%p400_p9) target bundleno = 1297 (0x511), region = 72  ;;  %p452_p10 = scmp.lt.s32.totalorder (!%p400_p9), %s2343_s22, 2 }
  0x11   : > { %s444_s20 = sand.u32 (!%p400_p9), 1, %s2205_s26  }
  0x12   : > { %s2742_s27 = scalar_lea.sflag (!%p400_p9), [#allocation3], %s444_s20 }
  0x15   : > { %v1997_v0 = vld [vmem:[%s2802_s1 + $0x84] ss:$16 sps:$4 sm:$0xff]   ;;  %v1999_v1 = vld [vmem:[%s2802_s1 + $0x8c] ss:$16 sps:$4 sm:$0xff]   ;;  %v2215_v2 = vmov 0   ;;  %s453_s17 = scalar_select %p452_p10, %s2343_s22, 2 }
  0x16   : > { %648 = vmatprep.mubr.bf16.mxu0 %v2215_v2  ;;  %691 = vmatprep.mubr.bf16.mxu1 %v2215_v2  ;;  %v2001_v3 = vld [vmem:[%s2802_s1 + $0x80] ss:$16 sps:$4 sm:$0xff]   ;;  %v2002_v4 = vld [vmem:[%s2802_s1 + $0x88] ss:$16 sps:$4 sm:$0xff]   ;;  %v2003_v5 = vld [vmem:[%s2802_s1 + $0x64] ss:$16 sps:$4 sm:$0xff]  }
  0x17   : > { %622 = vmatprep.subr.bf16.mxu0 %v1997_v0  ;;  %665 = vmatprep.subr.bf16.mxu1 %v1999_v1  ;;  %v2005_v6 = vld [vmem:[%s2802_s1 + $0x6c] ss:$16 sps:$4 sm:$0xff]   ;;  %v2007_v7 = vld [vmem:[%s2802_s1 + $0x60] ss:$16 sps:$4 sm:$0xff]   ;;  %v2008_v8 = vld [vmem:[%s2802_s1 + $0x68] ss:$16 sps:$4 sm:$0xff]  }
  0x18   : > { %623 = vmatpush1.bf16.msra.mxu0 %v2001_v3  ;;  %666 = vmatpush1.bf16.msra.mxu1 %v2002_v4  ;;  %v2009_v9 = vld [vmem:[%s2802_s1 + $0x44] ss:$16 sps:$4 sm:$0xff]   ;;  %v2011_v10 = vld [vmem:[%s2802_s1 + $0x4c] ss:$16 sps:$4 sm:$0xff]   ;;  %v2013_v11 = vld [vmem:[%s2802_s1 + $0x40] ss:$16 sps:$4 sm:$0xff]  }
  0x19   : > { %624 = vmatprep.subr.bf16.mxu0 %v2003_v5  ;;  %667 = vmatprep.subr.bf16.mxu1 %v2005_v6  ;;  %v2014_v12 = vld [vmem:[%s2802_s1 + $0x48] ss:$16 sps:$4 sm:$0xff]   ;;  %v2015_v13 = vld [vmem:[%s2802_s1 + $0x24] ss:$16 sps:$4 sm:$0xff]   ;;  %v2017_v14 = vld [vmem:[%s2802_s1 + $0x2c] ss:$16 sps:$4 sm:$0xff]  }
  0x1a   : > { %s1742_s19 = sshll.u32 %s453_s17, 3  ;;  %v2019_v15 = vld [vmem:[%s2802_s1 + $0x20] ss:$16 sps:$4 sm:$0xff]   ;;  %v2020_v16 = vld [vmem:[%s2802_s1 + $0x28] ss:$16 sps:$4 sm:$0xff]   ;;  %vm612_vm0 = vcmask 654336  }
  0x1b   : > { %v2021_v17 = vld [vmem:[%s2802_s1 + $0x4] ss:$16 sps:$4 sm:$0xff]   ;;  %v2023_v18 = vld [vmem:[%s2802_s1 + $0xc] ss:$16 sps:$4 sm:$0xff]   ;;  %s455_s25 = scalar_lea.vmem %s2801_s0, %s1742_s19  ;;  %v2025_v19 = vld [vmem:[%s2802_s1] ss:$16 sps:$4 sm:$0xff]  }
  0x1c   : > { %625 = vmatpush1.bf16.msra.mxu0 %v2007_v7  ;;  %668 = vmatpush1.bf16.msra.mxu1 %v2008_v8  ;;  %v2026_v20 = vld [vmem:[%s2802_s1 + $0x8] ss:$16 sps:$4 sm:$0xff]   ;;  %v467_v21 = vld [vmem:[%s455_s25] sm:$0xff]  ;;  %v2029_v23 = vld [vmem:[%s2804_s3 + $0x74] ss:$8 sps:$4 sm:$0xff]   ;;  %vm2217_vm1 = vmmov 0  }
  0x1d   : > { %626 = vmatprep.subr.bf16.mxu0 %v2009_v9  ;;  %669 = vmatprep.subr.bf16.mxu1 %v2011_v10  ;;  %v468_v22 = vld [vmem:[%s455_s25 + $0x8] sm:$0xff]  ;;  %v2032_v24 = vld [vmem:[%s2804_s3 + $0x174] ss:$8 sps:$4 sm:$0xff]   ;;  %v2027_v26 = vld [vmem:[%s2804_s3 + $0x70] ss:$8 sps:$4 sm:$0xff]   ;;  %vm1535_vm2 = vcmask 523264  }
  0x1e   : > { %v469_v25 = vpack.c.bf16 %v468_v22, %v467_v21  ;;  %v2030_v27 = vld [vmem:[%s2804_s3 + $0x170] ss:$8 sps:$4 sm:$0xff]   ;;  %v2035_v28 = vld [vmem:[%s2804_s3 + $0x64] ss:$8 sps:$4 sm:$0xff]   ;;  %v2033_v30 = vld [vmem:[%s2804_s3 + $0x60] ss:$8 sps:$4 sm:$0xff]  }
  0x1f   : > { %v2038_v29 = vld [vmem:[%s2804_s3 + $0x164] ss:$8 sps:$4 sm:$0xff]   ;;  %v2036_v31 = vld [vmem:[%s2804_s3 + $0x160] ss:$8 sps:$4 sm:$0xff]   ;;  %v2041_v32 = vld [vmem:[%s2804_s3 + $0x54] ss:$8 sps:$4 sm:$0xff]  }
  0x20   : > { %627 = vmatpush1.bf16.msra.mxu0 %v2013_v11  ;;  %670 = vmatpush1.bf16.msra.mxu1 %v2014_v12  ;;  %v2044_v33 = vld [vmem:[%s2804_s3 + $0x154] ss:$8 sps:$4 sm:$0xff]   ;;  %v2039_v34 = vld [vmem:[%s2804_s3 + $0x50] ss:$8 sps:$4 sm:$0xff]   ;;  %v2047_v36 = vld [vmem:[%s2804_s3 + $0x44] ss:$8 sps:$4 sm:$0xff]  }
  0x21   : > { %628 = vmatprep.subr.bf16.mxu0 %v2015_v13  ;;  %671 = vmatprep.subr.bf16.mxu1 %v2017_v14  ;;  %v2042_v35 = vld [vmem:[%s2804_s3 + $0x150] ss:$8 sps:$4 sm:$0xff]   ;;  %v2050_v37 = vld [vmem:[%s2804_s3 + $0x144] ss:$8 sps:$4 sm:$0xff]   ;;  %v2045_v38 = vld [vmem:[%s2804_s3 + $0x40] ss:$8 sps:$4 sm:$0xff]  }
  0x22   : > { %v2048_v39 = vld [vmem:[%s2804_s3 + $0x140] ss:$8 sps:$4 sm:$0xff]   ;;  %v2053_v40 = vld [vmem:[%s2804_s3 + $0x34] ss:$8 sps:$4 sm:$0xff]   ;;  %v2051_v42 = vld [vmem:[%s2804_s3 + $0x30] ss:$8 sps:$4 sm:$0xff]  }
  0x23   : > { %v2056_v41 = vld [vmem:[%s2804_s3 + $0x134] ss:$8 sps:$4 sm:$0xff]   ;;  %v2054_v43 = vld [vmem:[%s2804_s3 + $0x130] ss:$8 sps:$4 sm:$0xff]   ;;  %v2059_v44 = vld [vmem:[%s2804_s3 + $0x24] ss:$8 sps:$4 sm:$0xff]  }
  0x24   : > { %629 = vmatpush1.bf16.msra.mxu0 %v2019_v15  ;;  %672 = vmatpush1.bf16.msra.mxu1 %v2020_v16  ;;  %v2062_v45 = vld [vmem:[%s2804_s3 + $0x124] ss:$8 sps:$4 sm:$0xff]   ;;  %v2057_v46 = vld [vmem:[%s2804_s3 + $0x20] ss:$8 sps:$4 sm:$0xff]   ;;  %v2065_v48 = vld [vmem:[%s2804_s3 + $0x14] ss:$8 sps:$4 sm:$0xff]  }
  0x25   : > { %630 = vmatprep.subr.bf16.mxu0 %v2021_v17  ;;  %673 = vmatprep.subr.bf16.mxu1 %v2023_v18  ;;  %v2060_v47 = vld [vmem:[%s2804_s3 + $0x120] ss:$8 sps:$4 sm:$0xff]   ;;  %v2068_v49 = vld [vmem:[%s2804_s3 + $0x114] ss:$8 sps:$4 sm:$0xff]   ;;  %v2063_v50 = vld [vmem:[%s2804_s3 + $0x10] ss:$8 sps:$4 sm:$0xff]  }
  0x26   : > { %v2066_v51 = vld [vmem:[%s2804_s3 + $0x110] ss:$8 sps:$4 sm:$0xff]   ;;  %v2071_v52 = vld [vmem:[%s2804_s3 + $0x4] ss:$8 sps:$4 sm:$0xff]   ;;  %v2069_v54 = vld [vmem:[%s2804_s3] ss:$8 sps:$4 sm:$0xff]  }
  0x27   : > { %v2074_v53 = vld [vmem:[%s2804_s3 + $0x104] ss:$8 sps:$4 sm:$0xff]   ;;  %v2072_v55 = vld [vmem:[%s2804_s3 + $0x100] ss:$8 sps:$4 sm:$0xff]   ;;  %v2077_v56 = vld [vmem:[%s2804_s3 + $0xf4] ss:$8 sps:$4 sm:$0xff]  }
  0x28   : > { %631 = vmatpush1.bf16.msra.mxu0 %v2025_v19  ;;  %674 = vmatpush1.bf16.msra.mxu1 %v2026_v20  ;;  %v2080_v57 = vld [vmem:[%s2804_s3 + $0x1f4] ss:$8 sps:$4 sm:$0xff]   ;;  %v2075_v58 = vld [vmem:[%s2804_s3 + $0xf0] ss:$8 sps:$4 sm:$0xff]   ;;  %v2083_v60 = vld [vmem:[%s2804_s3 + $0xe4] ss:$8 sps:$4 sm:$0xff]  }
  0x29   : > { %1110 = vmatprep.subr.bf16.mxu0 %v2029_v23  ;;  %1153 = vmatprep.subr.bf16.mxu1 %v2032_v24  ;;  %v2078_v59 = vld [vmem:[%s2804_s3 + $0x1f0] ss:$8 sps:$4 sm:$0xff]   ;;  %v2086_v61 = vld [vmem:[%s2804_s3 + $0x1e4] ss:$8 sps:$4 sm:$0xff]   ;;  %v2081_v62 = vld [vmem:[%s2804_s3 + $0xe0] ss:$8 sps:$4 sm:$0xff]  }
  0x2a   : > { %v2084_v63 = vld [vmem:[%s2804_s3 + $0x1e0] ss:$8 sps:$4 sm:$0xff]   ;;  %v2089_v0 = vld [vmem:[%s2804_s3 + $0xd4] ss:$8 sps:$4 sm:$0xff]   ;;  %v2087_v2 = vld [vmem:[%s2804_s3 + $0xd0] ss:$8 sps:$4 sm:$0xff]  }
  0x2b   : > { %1763 = vmatmul.mubr.msk.bf16.vlgmr.msra.gmra.mxu0 %vm612_vm0, %v469_v25  ;;  %1764 = vmatmul.mubr.msk.bf16.vlgmr.msra.gmra.mxu1 %vm612_vm0, %v469_v25  ;;  %v2092_v1 = vld [vmem:[%s2804_s3 + $0x1d4] ss:$8 sps:$4 sm:$0xff]   ;;  %v2090_v3 = vld [vmem:[%s2804_s3 + $0x1d0] ss:$8 sps:$4 sm:$0xff]   ;;  %v2095_v4 = vld [vmem:[%s2804_s3 + $0xc4] ss:$8 sps:$4 sm:$0xff]   ;;  %v492_v25 = vlaneseq }
  0x2c   : > { %1111 = vmatpush1.bf16.msra.mxu0 %v2027_v26  ;;  %1154 = vmatpush1.bf16.msra.mxu1 %v2030_v27  ;;  %v2098_v5 = vld [vmem:[%s2804_s3 + $0x1c4] ss:$8 sps:$4 sm:$0xff]   ;;  %v2093_v6 = vld [vmem:[%s2804_s3 + $0xc0] ss:$8 sps:$4 sm:$0xff]   ;;  %v2101_v8 = vld [vmem:[%s2804_s3 + $0xb4] ss:$8 sps:$4 sm:$0xff]  }
  0x2d   : > { %1112 = vmatprep.subr.bf16.mxu0 %v2035_v28  ;;  %1155 = vmatprep.subr.bf16.mxu1 %v2038_v29  ;;  %v2096_v7 = vld [vmem:[%s2804_s3 + $0x1c0] ss:$8 sps:$4 sm:$0xff]   ;;  %v2104_v9 = vld [vmem:[%s2804_s3 + $0x1b4] ss:$8 sps:$4 sm:$0xff]   ;;  %v2099_v10 = vld [vmem:[%s2804_s3 + $0xb0] ss:$8 sps:$4 sm:$0xff]  }
  0x2e   : > { %v2102_v11 = vld [vmem:[%s2804_s3 + $0x1b0] ss:$8 sps:$4 sm:$0xff]   ;;  %v2107_v12 = vld [vmem:[%s2804_s3 + $0xa4] ss:$8 sps:$4 sm:$0xff]   ;;  %v2105_v14 = vld [vmem:[%s2804_s3 + $0xa0] ss:$8 sps:$4 sm:$0xff]  }
  0x2f   : > { %v2110_v13 = vld [vmem:[%s2804_s3 + $0x1a4] ss:$8 sps:$4 sm:$0xff]   ;;  %v2108_v15 = vld [vmem:[%s2804_s3 + $0x1a0] ss:$8 sps:$4 sm:$0xff]   ;;  %v2113_v16 = vld [vmem:[%s2804_s3 + $0x94] ss:$8 sps:$4 sm:$0xff]  }
  0x30   : > { %1113 = vmatpush1.bf16.msra.mxu0 %v2033_v30  ;;  %1156 = vmatpush1.bf16.msra.mxu1 %v2036_v31  ;;  %v2116_v17 = vld [vmem:[%s2804_s3 + $0x194] ss:$8 sps:$4 sm:$0xff]   ;;  %v2111_v18 = vld [vmem:[%s2804_s3 + $0x90] ss:$8 sps:$4 sm:$0xff]   ;;  %v2119_v20 = vld [vmem:[%s2804_s3 + $0x84] ss:$8 sps:$4 sm:$0xff]  }
  0x31   : > { %1114 = vmatprep.subr.bf16.mxu0 %v2041_v32  ;;  %1157 = vmatprep.subr.bf16.mxu1 %v2044_v33  ;;  %v2114_v19 = vld [vmem:[%s2804_s3 + $0x190] ss:$8 sps:$4 sm:$0xff]   ;;  %v2122_v21 = vld [vmem:[%s2804_s3 + $0x184] ss:$8 sps:$4 sm:$0xff]   ;;  %v2117_v22 = vld [vmem:[%s2804_s3 + $0x80] ss:$8 sps:$4 sm:$0xff]  }
  0x32   : > { %v2120_v23 = vld [vmem:[%s2804_s3 + $0x180] ss:$8 sps:$4 sm:$0xff]   ;;  %v2123_v24 = vld [vmem:[%s2806_s5 + $0x78] sm:$0xff]   ;;  %v2602_v26 = vshrl.u32 %v492_v25, 7  ;;  %vm1606_vm3 = vcmask 261120   ;;  %s1740_s25 = sshll.u32 %s444_s20, 4 }
  0x33   : > { %v490_v31 = vld [vmem:[%s2803_s2] sm:$0xf]  ;;  %vm1651_vm4 = vcmask 367616   ;;  %s446_s24 = scalar_lea.vmem [#allocation2], %s1740_s25  ;;  %s1663_s14 = ssub.s32 (%p2329_p5), 3, %s2343_s22 }
  0x34   : > { %1115 = vmatpush1.bf16.msra.mxu0 %v2039_v34  ;;  %1158 = vmatpush1.bf16.msra.mxu1 %v2042_v35  ;;  %v498_v27 = vsub.s32 1, %v2602_v26  ;;  %v506_v28 = vsub.s32 3, %v2602_v26  ;;  %v494_v29 = vsub.s32 0, %v2602_v26  ;;  %v502_v30 = vsub.s32 2, %v2602_v26  ;;  %p1664_p11 = scmp.lt.s32.totalorder (%p2329_p5), %s1663_s14, 2 }
  0x35   : > { %1116 = vmatprep.subr.bf16.mxu0 %v2047_v36  ;;  %1159 = vmatprep.subr.bf16.mxu1 %v2050_v37 }
  0x36   : > { %v499_v34 = vrot.slane %v490_v31, %v498_v27  ;;  %v507_v35 = vrot.slane %v490_v31, %v506_v28  ;;  %v495_v36 = vrot.slane %v490_v31, %v494_v29  ;;  %v503_v37 = vrot.slane %v490_v31, %v502_v30 }
  0x38   : > { %1117 = vmatpush1.bf16.msra.mxu0 %v2045_v38  ;;  %1160 = vmatpush1.bf16.msra.mxu1 %v2048_v39 }
  0x39   : > { %1118 = vmatprep.subr.bf16.mxu0 %v2053_v40  ;;  %1161 = vmatprep.subr.bf16.mxu1 %v2056_v41 }
  0x3c   : > { %1119 = vmatpush1.bf16.msra.mxu0 %v2051_v42  ;;  %1162 = vmatpush1.bf16.msra.mxu1 %v2054_v43 }
  0x3d   : > { %1120 = vmatprep.subr.bf16.mxu0 %v2059_v44  ;;  %1163 = vmatprep.subr.bf16.mxu1 %v2062_v45 }
  0x40   : > { %1121 = vmatpush1.bf16.msra.mxu0 %v2057_v46  ;;  %1164 = vmatpush1.bf16.msra.mxu1 %v2060_v47 }
  0x41   : > { %1122 = vmatprep.subr.bf16.mxu0 %v2065_v48  ;;  %1165 = vmatprep.subr.bf16.mxu1 %v2068_v49 }
  0x44   : > { %1123 = vmatpush1.bf16.msra.mxu0 %v2063_v50  ;;  %1166 = vmatpush1.bf16.msra.mxu1 %v2066_v51 }
  0x45   : > { %1124 = vmatprep.subr.bf16.mxu0 %v2071_v52  ;;  %1167 = vmatprep.subr.bf16.mxu1 %v2074_v53 }
  0x48   : > { %1125 = vmatpush1.bf16.msra.mxu0 %v2069_v54  ;;  %1168 = vmatpush1.bf16.msra.mxu1 %v2072_v55 }
  0x49   : > { %1126 = vmatprep.subr.bf16.mxu0 %v2077_v56  ;;  %1169 = vmatprep.subr.bf16.mxu1 %v2080_v57 }
  0x4c   : > { %1127 = vmatpush2.bf16.msra.mxu0 %v2075_v58  ;;  %1170 = vmatpush2.bf16.msra.mxu1 %v2078_v59 }
  0x4d   : > { %1128 = vmatprep.subr.bf16.mxu0 %v2083_v60  ;;  %1171 = vmatprep.subr.bf16.mxu1 %v2086_v61 }
  0x50   : > { %1129 = vmatpush2.bf16.msra.mxu0 %v2081_v62  ;;  %1172 = vmatpush2.bf16.msra.mxu1 %v2084_v63  ;;  %v2124_v62 = vld [vmem:[%s2806_s5 + $0x38] sm:$0xff]  }
  0x51   : > { %1130 = vmatprep.subr.bf16.mxu0 %v2089_v0  ;;  %1173 = vmatprep.subr.bf16.mxu1 %v2092_v1  ;;  %v2125_v1 = vld [vmem:[%s2806_s5 + $0x70] sm:$0xff]  }
  0x54   : > { %1131 = vmatpush2.bf16.msra.mxu0 %v2087_v2  ;;  %1174 = vmatpush2.bf16.msra.mxu1 %v2090_v3  ;;  %v2126_v2 = vld [vmem:[%s2806_s5 + $0x30] sm:$0xff]   ;;  %v2127_v3 = vld [vmem:[%s2806_s5 + $0x68] sm:$0xff]  }
  0x55   : > { %1132 = vmatprep.subr.bf16.mxu0 %v2095_v4  ;;  %1175 = vmatprep.subr.bf16.mxu1 %v2098_v5  ;;  %v2128_v4 = vld [vmem:[%s2806_s5 + $0x28] sm:$0xff]   ;;  %v2129_v5 = vld [vmem:[%s2806_s5 + $0x60] sm:$0xff]  }
  0x58   : > { %1133 = vmatpush2.bf16.msra.mxu0 %v2093_v6  ;;  %1176 = vmatpush2.bf16.msra.mxu1 %v2096_v7  ;;  %v2130_v6 = vld [vmem:[%s2806_s5 + $0x20] sm:$0xff]   ;;  %v2131_v7 = vld [vmem:[%s2806_s5 + $0x58] sm:$0xff]  }
  0x59   : > { %1134 = vmatprep.subr.bf16.mxu0 %v2101_v8  ;;  %1177 = vmatprep.subr.bf16.mxu1 %v2104_v9  ;;  %v2132_v8 = vld [vmem:[%s2806_s5 + $0x18] sm:$0xff]   ;;  %v2133_v9 = vld [vmem:[%s2806_s5 + $0x50] sm:$0xff]  }
  0x5c   : > { %1135 = vmatpush2.bf16.msra.mxu0 %v2099_v10  ;;  %1178 = vmatpush2.bf16.msra.mxu1 %v2102_v11  ;;  %v2134_v10 = vld [vmem:[%s2806_s5 + $0x10] sm:$0xff]   ;;  %v2135_v11 = vld [vmem:[%s2806_s5 + $0x48] sm:$0xff]  }
  0x5d   : > { %1136 = vmatprep.subr.bf16.mxu0 %v2107_v12  ;;  %1179 = vmatprep.subr.bf16.mxu1 %v2110_v13  ;;  %v2136_v12 = vld [vmem:[%s2806_s5 + $0x8] sm:$0xff]   ;;  %v2137_v13 = vld [vmem:[%s2806_s5 + $0x40] sm:$0xff]  }
  0x60   : > { %1137 = vmatpush2.bf16.msra.mxu0 %v2105_v14  ;;  %1180 = vmatpush2.bf16.msra.mxu1 %v2108_v15  ;;  %v2138_v14 = vld [vmem:[%s2806_s5] sm:$0xff]   ;;  %v2139_v15 = vld [vmem:[%s2808_s7 + $0x38] sm:$0xff]  }
  0x61   : > { %1138 = vmatprep.subr.bf16.mxu0 %v2113_v16  ;;  %1181 = vmatprep.subr.bf16.mxu1 %v2116_v17  ;;  %v2216_v16 = vmov 0.0   ;;  %v2140_v17 = vld [vmem:[%s2808_s7 + $0x30] sm:$0xff]  }
  0x64   : > { %1139 = vmatpush2.bf16.msra.mxu0 %v2111_v18  ;;  %1182 = vmatpush2.bf16.msra.mxu1 %v2114_v19  ;;  %v2141_v18 = vld [vmem:[%s2808_s7 + $0x28] sm:$0xff]   ;;  %v2142_v19 = vld [vmem:[%s2808_s7 + $0x20] sm:$0xff]  }
  0x65   : > { %1140 = vmatprep.subr.bf16.mxu0 %v2119_v20  ;;  %1183 = vmatprep.subr.bf16.mxu1 %v2122_v21  ;;  %v778_v20 = vld [vmem:[%s2805_s4] sm:$0x3] }
  0x66   : > { %v787_v21 = vrot.slane %v778_v20, %v498_v27 }
  0x68   : > { %1141 = vmatpush2.bf16.msra.mxu0 %v2117_v22  ;;  %1184 = vmatpush2.bf16.msra.mxu1 %v2120_v23  ;;  %v783_v22 = vrot.slane %v778_v20, %v494_v29 }
  0x69   : > { %1875 = vmatprep.subr.bf16.mxu0 %v2123_v24  ;;  %1914 = vmatprep.subr.bf16.mxu1 %v2216_v16 }
  0xeb   : > { %v650_v32 = vpop.f32.mrf.mxu0  ;;  %v693_v33 = vpop.f32.mrf.mxu1 }
  0xec   : > { %v651_v46 = vadd.f32 %v650_v32, %v495_v36  ;;  %v694_v47 = vadd.f32 %v693_v33, %v503_v37 }
  0xed   : > { %v652_v38 = vpop.f32.mrf.mxu0  ;;  %v695_v39 = vpop.f32.mrf.mxu1 }
  0xee   : > { %v653_v42 = vadd.f32 %v652_v38, %v499_v34  ;;  %v696_v43 = vadd.f32 %v695_v39, %v507_v35  ;;  %v702_v58 = vmax.f32 %v651_v46, 0.0  ;;  %v704_v59 = vmax.f32 %v694_v47, 0.0  ;;  %v2144_v46 = vld [vmem:[%s2808_s7 + $0x10] sm:$0xff]   ;;  %v2145_v47 = vld [vmem:[%s2808_s7 + $0x8] sm:$0xff]  }
  0xef   : > { %v654_v40 = vpop.f32.mrf.mxu0  ;;  %v697_v41 = vpop.f32.mrf.mxu1 }
  0xf0   : > { %v655_v44 = vadd.f32 %v654_v40, %v495_v36  ;;  %v698_v45 = vadd.f32 %v697_v41, %v503_v37  ;;  %v703_v54 = vmax.f32 %v653_v42, 0.0  ;;  %v705_v55 = vmax.f32 %v696_v43, 0.0 }
  0xf1   : > { %v656_v48 = vpop.f32.mrf.mxu0  ;;  %v699_v49 = vpop.f32.mrf.mxu1 }
  0xf2   : > { %v657_v50 = vadd.f32 %v656_v48, %v499_v34  ;;  %v700_v51 = vadd.f32 %v699_v49, %v507_v35  ;;  %v706_v52 = vmax.f32 %v655_v44, 0.0  ;;  %v708_v53 = vmax.f32 %v698_v45, 0.0  ;;  %v2143_v45 = vld [vmem:[%s2808_s7 + $0x18] sm:$0xff]   ;;  %v2146_v48 = vld [vmem:[%s2808_s7] sm:$0xff]  }
  0xf3   : > { %v2147_v49 = vld [vmem:[%s2810_s9 + $0x18] sm:$0xff]  }
  0xf4   : > { %v707_v56 = vmax.f32 %v657_v50, 0.0  ;;  %v709_v57 = vmax.f32 %v700_v51, 0.0  ;;  %v710_v63 = vpack.c.bf16 %v706_v52, %v702_v58  ;;  %v712_v0 = vpack.c.bf16 %v708_v53, %v704_v59  ;;  %v1829_v53 = vld [vmem:[%s2807_s6] ss:$0 sm:$0xff] }
  0xf6   : > { %v711_v60 = vpack.c.bf16 %v707_v56, %v703_v54  ;;  %v713_v61 = vpack.c.bf16 %v709_v57, %v705_v55 }
  0xf8   : > { %1142 = vmatprep.mubr.bf16.mxu0 %v711_v60  ;;  %1185 = vmatprep.mubr.bf16.mxu1 %v713_v61 }
  0xf9   : > { %1143 = vmatmul.mubr.bf16.vlgmr.msra.gmra.mxu0 %v710_v63  ;;  %1186 = vmatmul.mubr.bf16.vlgmr.msra.gmra.mxu1 %v712_v0  ;;  %v2149_v63 = vld [vmem:[%s2810_s9 + $0x8] sm:$0xff]   ;;  %v2150_v0 = vld [vmem:[%s2810_s9] sm:$0xff]  }
  0xfa   : > { %1876 = vmatpush3.bf16.msra.mxu0 %v2124_v62  ;;  %1915 = vmatpush3.bf16.msra.mxu1 %v2139_v15  ;;  %v2148_v62 = vld [vmem:[%s2810_s9 + $0x10] sm:$0xff]  }
  0xfb   : > { %1877 = vmatprep.subr.bf16.mxu0 %v2125_v1  ;;  %1916 = vmatprep.subr.bf16.mxu1 %v2216_v16  ;;  %v1846_v1 = vld [vmem:[%s2809_s8] ss:$0 sm:$0xff] }
  0xfc   : > { %1930 = vmatprep.mubr.msk.bf16.mxu1 %vm2217_vm1, %v2216_v16 }
  0xfe   : > { %1878 = vmatpush3.bf16.msra.mxu0 %v2126_v2  ;;  %1917 = vmatpush3.bf16.msra.mxu1 %v2140_v17 }
  0xff   : > { %1879 = vmatprep.subr.bf16.mxu0 %v2127_v3  ;;  %1918 = vmatprep.subr.bf16.mxu1 %v2216_v16 }
 0x102   : > { %1880 = vmatpush3.bf16.msra.mxu0 %v2128_v4  ;;  %1919 = vmatpush3.bf16.msra.mxu1 %v2141_v18 }
 0x103   : > { %1881 = vmatprep.subr.bf16.mxu0 %v2129_v5  ;;  %1920 = vmatprep.subr.bf16.mxu1 %v2216_v16 }
 0x106   : > { %1882 = vmatpush3.bf16.msra.mxu0 %v2130_v6  ;;  %1921 = vmatpush3.bf16.msra.mxu1 %v2142_v19 }
 0x107   : > { %1883 = vmatprep.subr.bf16.mxu0 %v2131_v7  ;;  %1922 = vmatprep.subr.bf16.mxu1 %v2216_v16 }
 0x10a   : > { %1884 = vmatpush3.bf16.msra.mxu0 %v2132_v8  ;;  %1923 = vmatpush3.bf16.msra.mxu1 %v2143_v45 }
 0x10b   : > { %1885 = vmatprep.subr.bf16.mxu0 %v2133_v9  ;;  %1924 = vmatprep.subr.bf16.mxu1 %v2216_v16 }
 0x10e   : > { %1886 = vmatpush3.bf16.msra.mxu0 %v2134_v10  ;;  %1925 = vmatpush3.bf16.msra.mxu1 %v2144_v46 }
 0x10f   : > { %1887 = vmatprep.subr.bf16.mxu0 %v2135_v11  ;;  %1926 = vmatprep.subr.bf16.mxu1 %v2216_v16  ;;  %v2151_v11 = vld [vmem:[%s2812_s11 + $0x8] sm:$0xff]  }
 0x112   : > { %1888 = vmatpush3.bf16.msra.mxu0 %v2136_v12  ;;  %1927 = vmatpush3.bf16.msra.mxu1 %v2145_v47  ;;  %v2152_v12 = vld [vmem:[%s2812_s11] sm:$0xff]  }
 0x113   : > { %1889 = vmatprep.subr.bf16.mxu0 %v2137_v13  ;;  %1928 = vmatprep.subr.bf16.mxu1 %v2216_v16  ;;  %v1855_v13 = vld [vmem:[%s2811_s10] ss:$0 sm:$0xff] }
 0x116   : > { %1890 = vmatpush3.bf16.msra.mxu0 %v2138_v14  ;;  %1929 = vmatpush3.bf16.msra.mxu1 %v2146_v48 }
 0x117   : > { %1934 = vmatprep.subr.bf16.mxu0 %v2216_v16  ;;  %1946 = vmatprep.subr.bf16.mxu1 %v2216_v16 }
 0x1b9   : > { %v1144_v23 = vpop.f32.mrf.mxu0  ;;  %v1187_v24 = vpop.f32.mrf.mxu1 }
 0x1ba   : > { %v1145_v31 = vadd.f32 %v1144_v23, %v783_v22 }
 0x1bb   : > { %v1146_v25 = vpop.f32.mrf.mxu0  ;;  %v1189_v28 = vpop.f32.mrf.mxu1 }
 0x1bc   : > { %v1147_v30 = vadd.f32 %v1146_v25, %v787_v21  ;;  %v1188_v39 = vadd.f32 %v1187_v24, %v1145_v31 }
 0x1bd   : > { %v1148_v32 = vpop.f32.mrf.mxu0  ;;  %v1191_v33 = vpop.f32.mrf.mxu1 }
 0x1be   : > { %v1149_v34 = vadd.f32 %v1148_v32, %v783_v22  ;;  %v1190_v36 = vadd.f32 %v1189_v28, %v1147_v30  ;;  %v1196_v29 = vmax.f32 %v1188_v39, 0.0 }
 0x1bf   : > { %v1150_v35 = vpop.f32.mrf.mxu0  ;;  %v1193_v40 = vpop.f32.mrf.mxu1 }
 0x1c0   : > { %v1192_v37 = vadd.f32 %v1191_v33, %v1149_v34  ;;  %v1151_v38 = vadd.f32 %v1150_v35, %v787_v21  ;;  %v1197_v42 = vmax.f32 %v1190_v36, 0.0 }
 0x1c2   : > { %v1194_v41 = vadd.f32 %v1193_v40, %v1151_v38  ;;  %v1198_v27 = vmax.f32 %v1192_v37, 0.0 }
 0x1c4   : > { %v1199_v26 = vmax.f32 %v1194_v41, 0.0  ;;  %v1200_v44 = vpack.c.bf16 %v1198_v27, %v1196_v29 }
 0x1c6   : > { %v1201_v43 = vpack.c.bf16 %v1199_v26, %v1197_v42 }
 0x1c8   : > { %1369 = vmatprep.mubr.bf16.mxu0 %v1201_v43 }
 0x1c9   : > { %1370 = vmatmul.mubr.bf16.vlgmr.msra.gmra.mxu0 %v1200_v44 }
 0x1ca   : > { %1942 = vmatprep.mubr.msk.bf16.mxu0 %vm2217_vm1, %v2216_v16  ;;  %1935 = vmatpush3.bf16.msra.mxu0 %v2147_v49 }
 0x1cb   : > { %1936 = vmatprep.subr.bf16.mxu0 %v2216_v16 }
 0x1ce   : > { %1937 = vmatpush3.bf16.msra.mxu0 %v2148_v62 }
 0x1cf   : > { %1938 = vmatprep.subr.bf16.mxu0 %v2216_v16 }
 0x1d2   : > { %1939 = vmatpush3.bf16.msra.mxu0 %v2149_v63 }
 0x1d3   : > { %1940 = vmatprep.subr.bf16.mxu0 %v2216_v16 }
 0x1d6   : > { %1941 = vmatpush3.bf16.msra.mxu0 %v2150_v0 }
 0x289   : > { %v1891_v50 = vpop.f32.mrf.mxu0 }
 0x28b   : > { %v1892_v51 = vpop.f32.mrf.mxu0 }
 0x28c   : > { %v1893_v52 = vadd.f32 %v1892_v51, %v1891_v50 }
 0x28d   : > { %v1894_v54 = vpop.f32.mrf.mxu0 }
 0x28e   : > { %v1372_v56 = vadd.f32 %v1893_v52, %v1829_v53 }
 0x28f   : > { %v1895_v55 = vpop.f32.mrf.mxu0 }
 0x290   : > { %v1896_v57 = vadd.f32 %v1895_v55, %v1894_v54  ;;  %v1378_v59 = vmax.f32 %v1372_v56, 0.0 }
 0x292   : > { %v1375_v58 = vadd.f32 %v1896_v57, %v1829_v53 }
 0x294   : > { %v1379_v60 = vmax.f32 %v1375_v58, 0.0 }
 0x296   : > { %v1380_v61 = vpack.c.bf16 %v1379_v60, %v1378_v59 }
 0x298   : > { %1931 = vmatmul.mubr.bf16.vlgmr.msra.gmra.mxu1 %v1380_v61 }
 0x299   : > { %1950 = vmatprep.mubr.msk.bf16.mxu1 %vm2217_vm1, %v2216_v16  ;;  %1947 = vmatpush3.bf16.msra.mxu1 %v2151_v11 }
 0x29a   : > { %1948 = vmatprep.subr.bf16.mxu1 %v2216_v16  ;;  %v1861_v16 = vld [vmem:[%s2813_s12] ss:$0 sm:$0xff] }
 0x29d   : > { %1949 = vmatpush3.bf16.msra.mxu1 %v2152_v12 }
 0x358   : > { %v1486_v2 = vpop.f32.mrf.mxu1 }
 0x359   : > { %v1487_v4 = vadd.f32 %v1846_v1, %v1486_v2 }
 0x35a   : > { %v1932_v3 = vpop.f32.mrf.mxu1 }
 0x35b   : > { %v1493_v8 = vmax.f32 %v1487_v4, 0.0 }
 0x35c   : > { %v1489_v5 = vpop.f32.mrf.mxu1 }
 0x35d   : > { %v1490_v6 = vadd.f32 %v1846_v1, %v1489_v5 }
 0x35e   : > { %v1933_v7 = vpop.f32.mrf.mxu1 }
 0x35f   : > { %v1494_v9 = vmax.f32 %v1490_v6, 0.0 }
 0x361   : > { %v1495_v10 = vpack.c.bf16 %v1494_v9, %v1493_v8 }
 0x363   : > { %1943 = vmatmul.mubr.msk.bf16.vlgmr.msra.gmra.mxu0 %vm1535_vm2, %v1495_v10 }
 0x423   : > { %v1573_v14 = vpop.f32.mrf.mxu0 }
 0x424   : > { %v1574_v17 = vadd.f32 %v1855_v13, %v1573_v14 }
 0x425   : > { %v1944_v15 = vpop.f32.mrf.mxu0 }
 0x426   : > { %v1580_v21 = vmax.f32 %v1574_v17, 0.0 }
 0x427   : > { %v1576_v18 = vpop.f32.mrf.mxu0 }
 0x428   : > { %v1577_v19 = vadd.f32 %v1855_v13, %v1576_v18 }
 0x429   : > { %v1945_v20 = vpop.f32.mrf.mxu0 }
 0x42a   : > { %v1581_v22 = vmax.f32 %v1577_v19, 0.0 }
 0x42c   : > { %v1582_v23 = vpack.c.bf16 %v1581_v22, %v1580_v21 }
 0x42e   : > { %1951 = vmatmul.mubr.msk.bf16.vlgmr.msra.gmra.mxu1 %vm1606_vm3, %v1582_v23 }
 0x4ee   : > { %v1644_v24 = vpop.f32.mrf.mxu1 }
 0x4ef   : > { %v1645_v25 = vadd.f32 %v1861_v16, %v1644_v24 }
 0x4f0   : > { %v1952_v28 = vpop.f32.mrf.mxu1 }
 0x4f1   : > { %1652 = vst.msk [vmem:[%s446_s24] sm:$0xff] %vm1651_vm4, %v1645_v25  ;;  %1661 = sbr.rel (!%p2329_p5) target bundleno = 1297 (0x511), region = 76 }
 0x4f2   : > { %v1647_v30 = vpop.f32.mrf.mxu1 }
 0x4f3   : > { %v1648_v31 = vadd.f32 %v1861_v16, %v1647_v30 }
 0x4f4   : > { %v1953_v32 = vpop.f32.mrf.mxu1 }
 0x4f5   : > { %1653 = vst.msk [vmem:[%s446_s24 + $0x8] sm:$0xff] %vm1651_vm4, %v1648_v31 }
 0x4f6   : > { %s2835_s14 = smov (!%p1664_p11, %s1663_s14), 2 }
 0x4f7   : > { %s2747_s30 = sshll.u32 %s2835_s14, 7 }
 0x4f8   : > { %s1668_s15 = ssub.s32 256, %s2747_s30 }
 0x4f9   : > { %1669 = vsyncadd %s2742_s27, %s1668_s15  ;;  %p1868_p12 = scmp.ne.s32.totalorder %s2747_s30, 0  ;;  %s1874_s19 = sshll.u32 %s2312_s29, 8 }
 0x4fa   : > { %s2756_s18 = scalar_lea.hbm %s2814_s13, %s1874_s19  ;;  %s1674_s20 = sshll.u32 %s446_s24, 4  ;;  %s2758_s20 = int_to_ptr.vmem [resolvable:$true] %s1674_s20 }
 0x4fb   : > { %s2153_s22 = scalar_lea.vmem %s2758_s20, %s2747_s30  ;;  %s2218_s25 = smov [#allocation2]  }
 0x4fc   : > { %p2154_p13 = scmp.ne.s32.totalorder %s2758_s20, %s2153_s22  ;;  %s2157_s21 = sshll.u32 %s2218_s25, 4  ;;  %s2158_s21 = int_to_ptr.vmem [resolvable:$false] %s2157_s21 }
 0x4fd   : > { %s2159_s29 = scalar_lea.vmem %s2158_s21, 512  ;;  %p2160_p2 = scmp.lt.s32.totalorder %s2758_s20, %s2158_s21 }
 0x4fe   : > { %p2155_p0 = pnand %p2154_p13, %p1868_p12  ;;  %p2161_p3 = scmp.lt.s32.totalorder %s2159_s29, %s2153_s22 }
 0x500   : > { %p2156_p1 = pneg %p2155_p0  ;;  %p2162_p4 = por %p2161_p3, %p2160_p2 }
 0x502   : > { %p2163_p5 = pnand %p2162_p4, %p2156_p1 }
 0x504   : > { %2166 = shalt.err (!%p2163_p5)
}
 0x505   : > { %s2167_s23 = scalar_lea.hbm %s2756_s18, %s2747_s30  ;;  %s2171_s15 = scalar_lea.hbm %s2814_s13, 384 }
 0x506   : > { %p2168_p7 = scmp.ne.s32.totalorder %s2756_s18, %s2167_s23  ;;  %p2172_p10 = scmp.lt.s32.totalorder %s2756_s18, %s2814_s13 }
 0x507   : > { %p2173_p11 = scmp.lt.s32.totalorder %s2171_s15, %s2167_s23 }
 0x508   : > { %p2169_p8 = pnand %p2168_p7, %p1868_p12 }
 0x509   : > { %p2174_p13 = por %p2173_p11, %p2172_p10 }
 0x50a   : > { %p2170_p9 = pneg %p2169_p8 }
 0x50c   : > { %p2175_p0 = pnand %p2174_p13, %p2170_p9 }
 0x50e   : > { %2178 = shalt.err (!%p2175_p0)
}
 0x50f   : > { %s2219_s17 = smov 128   ;;  %s2220_s22 = smov 8  }
 0x510   : > { %1680 = dma.vmem_to_hbm [thread:$0]  (%p1868_p12), %s2758_s20, %s2747_s30, %s2756_s18, %s2742_s27, %s2219_s17, %s2219_s17, %s2220_s22  }
 0x511 PF: > { %s2827_s25 = sld [smem:[#allocation5_spill]]  ;;  %p1959_p1 = scmp.ge.s32.totalorder %s2213_s28, 2 }
 0x513   : > { %p1956_p2 = pnand %p1959_p1, %p2333_p6 }
 0x515   : > { %p1957_p3 = pneg %p1956_p2 }
 0x517   : > { %s1689_s29 = sand.u32 1, %s2827_s25  }
 0x518   : > { %s1690_s23 = scalar_lea.sflag [#allocation3], %s1689_s29 }
 0x519   : > { %2196 = dma.done.wait (%p1957_p3), %s1690_s23, 256  }
 0x51a   : > { %2198 = vsyncadd (%p1957_p3), %s1690_s23, 4294967040  ;;  %s2829_s28 = sld [smem:[#allocation7_spill]]  ;;  %s2832_s25 = smov %s2205_s26 }
 0x51b   : > { %s2830_s24 = sld [smem:[#allocation6_spill]] }
 0x51c   : > { %s2831_s27 = sld [smem:[#allocation8_spill]] }
 0x520   : > { %p23_p4 = scmp.ge.s32.totalorder %s2829_s28, 4  }
 0x521   : > { %s2833_s26 = smov %s2830_s24 }
 0x522   :  { %25 = sbr.rel (!%p23_p4) target bundleno = 3 (0x3), region = 107 }
 0x527   :  { %1695 = vsyncpa [#allocation3], 1 }
 0x528   :  { %1697 = vsyncpa [#allocation3 + $0x1], 1 }

</bundles_post_ra>
